<compile_context>
chip_gen: v6e
topology: v6e:2x2x1
jax: 0.10.0
libtpu: 0.0.40
codegen_flags: <defaults>
</compile_context>

<pallas_src>
import functools

import jax
import jax.numpy as jnp
from jax.experimental import pallas as pl
from jax.experimental.pallas import tpu as pltpu


def _cdiv(a, b):
    return -(-a // b)


def _round_up(v, m):
    return (v + m - 1) // m * m


def _vmem_capacity_bytes():
    try:
        return int(pltpu.get_tpu_info().vmem_capacity_bytes)
    except Exception:
        return 64 * 1024 * 1024  # conservative fallback: v7x per-TC VMEM


def _ce_label_smooth_kernel(logits_ref, targets_ref, partial_ref, *,
                            epsilon, num_classes, batch, tile_b):
    # logits_ref : VMEM [TB, C]   input dtype (f32 or bf16)
    # targets_ref: VMEM [TB, 1]   int32 class ids
    # partial_ref: VMEM [1, 8, 128] f32 -- per-tile partial sum (lane-dense block)
    pid = pl.program_id(0)
    x = logits_ref[...]                                      # [TB, C] native dtype
    tb, c = x.shape

    # Validity mask for the ragged last tile (unpadded batch).  Must stay a
    # *select*: garbage in the boundary tile's pad rows may be NaN/Inf.
    row_ids = pid * tile_b + jax.lax.broadcasted_iota(jnp.int32, (tb, 1), 0)
    row_valid = row_ids < batch                              # [TB, 1] bool

    # Numerically-stable log-softmax pieces.  Elementwise ops stay in the input
    # dtype (bf16 packs [16,128] vregs on v6e/v7x); row sums accumulate in f32.
    m = jnp.max(x, axis=1, keepdims=True)                    # [TB, 1] native
    z = x - m                                                # [TB, C] native, <= 0
    sum_ez = jnp.sum(jnp.exp(z), axis=1, keepdims=True,
                     dtype=jnp.float32)                      # [TB, 1] f32
    lse = jnp.log(sum_ez)                                    # [TB, 1] f32

    # z at the target class via one (1, C) iota broadcast-compared with targets.
    tgt = targets_ref[...]                                   # [TB, 1] int32
    cls_row = jax.lax.broadcasted_iota(jnp.int32, (1, c), 1) # [1, C]
    is_t = cls_row == tgt                                    # [TB, C] bool (broadcast)
    zero = jnp.array(0, dtype=z.dtype)
    z_t = jnp.sum(jnp.where(is_t, z, zero), axis=1, keepdims=True,
                  dtype=jnp.float32)                         # [TB, 1] f32
    sum_z = jnp.sum(z, axis=1, keepdims=True,
                    dtype=jnp.float32)                       # [TB, 1] f32

    eps = jnp.float32(epsilon)
    inv_c = jnp.float32(1.0 / num_classes)
    # Folded loss (uses sum_c smoothed = 1):
    #   loss_b = lse - (1-eps)*z_t - (eps/C)*sum_c z_c
    per_row = lse - (1.0 - eps) * z_t - (eps * inv_c) * sum_z   # [TB, 1] f32
    per_row = jnp.where(row_valid, per_row, jnp.float32(0.0))

    partial = jnp.sum(per_row)                               # scalar f32
    partial_ref[...] = jnp.broadcast_to(partial, partial_ref.shape).astype(jnp.float32)


def _choose_tile_b(b, c, in_itemsize, compute_itemsize, vmem_limit, tile_b):
    if tile_b is None:
        # Per-row footprint: double-buffered input rows + ~4 compute-dtype
        # full-row temporaries (z, exp(z), mask/select, reduce staging) + slack.
        per_row = 2 * c * in_itemsize + 4 * c * compute_itemsize + 64
        budget = (vmem_limit * 3) // 4        # leave headroom for output/misc
        tile_b = max(8, (budget // per_row) // 8 * 8)
        # For large batches, keep >= ~8 grid steps so v7x's two TensorCores
        # both get work under dimension_semantics=("parallel",).
        if b >= 64:
            tile_b = min(tile_b, _round_up(_cdiv(b, 8), 8))
    if tile_b >= b:
        return b                              # single full-extent block (any B legal)
    return max(8, (tile_b // 8) * 8)          # sublane multiple for partial blocks


def cross_entropy_label_smooth(logits, targets, *, num_classes, epsilon=0.1,
                               tile_b=None):
    """logits: [B, num_classes] float (f32 or bf16), targets: [B] int -> scalar f32.

    Matches the PyTorch module's default (size_average=True):
        loss = (-smoothed_targets * log_softmax(logits, dim=1)).mean(0).sum()
    """
    b, c = logits.shape
    assert c == num_classes
    targets2d = targets.astype(jnp.int32).reshape(b, 1)

    in_itemsize = jnp.dtype(logits.dtype).itemsize
    compute_itemsize = in_itemsize if in_itemsize >= 2 else 2

    vmem_cap = _vmem_capacity_bytes()
    # ~96 MiB on v5e/v6e (128 MiB physical), ~48 MiB on v7x (64 MiB physical).
    vmem_limit = min((vmem_cap * 3) // 4, 96 * 1024 * 1024)

    tile_b = _choose_tile_b(b, c, in_itemsize, compute_itemsize, vmem_limit, tile_b)
    num_tiles = _cdiv(b, tile_b)

    kernel = functools.partial(
        _ce_label_smooth_kernel,
        epsilon=float(epsilon),
        num_classes=int(num_classes),
        batch=int(b),
        tile_b=int(tile_b),
    )

    partials = pl.pallas_call(
        kernel,
        out_shape=jax.ShapeDtypeStruct((num_tiles, 8, 128), jnp.float32),
        grid_spec=pltpu.PrefetchScalarGridSpec(
            num_scalar_prefetch=0,
            grid=(num_tiles,),
            in_specs=[
                pl.BlockSpec((tile_b, c), lambda i: (i, 0)),   # logits tile
                pl.BlockSpec((tile_b, 1), lambda i: (i, 0)),   # targets tile
            ],
            out_specs=pl.BlockSpec((1, 8, 128), lambda i: (i, 0, 0)),
        ),
        compiler_params=pltpu.CompilerParams(
            dimension_semantics=("parallel",),      # shards tiles across TCs on v7x
            vmem_limit_bytes=int(vmem_limit),
        ),
    )(logits, targets2d)

    # Final reduction over per-tile partials; divide by the GLOBAL batch size.
    return jnp.sum(partials[:, 0, 0]) / jnp.float32(b)


def _reference(logits, targets, num_classes, epsilon=0.1):
    # pure-JAX reference matching the PyTorch forward (size_average=True)
    x = logits.astype(jnp.float32)
    log_probs = jax.nn.log_softmax(x, axis=1)
    one_hot = jax.nn.one_hot(targets, num_classes, dtype=jnp.float32)
    smoothed = (1.0 - epsilon) * one_hot + epsilon / num_classes
    return jnp.sum(jnp.mean(-smoothed * log_probs, axis=0))


if __name__ == "__main__":
    num_classes = 32
    batch = 8
    epsilon = 0.1

    key = jax.random.PRNGKey(0)
    k_logits, k_tgt = jax.random.split(key)
    logits = jax.random.normal(k_logits, (batch, num_classes), dtype=jnp.float32)
    targets = jax.random.randint(k_tgt, (batch,), 0, num_classes, dtype=jnp.int32)

    loss = cross_entropy_label_smooth(
        logits, targets, num_classes=num_classes, epsilon=epsilon
    )
    loss = jax.block_until_ready(loss)

    ref = _reference(logits, targets, num_classes, epsilon)
    assert jnp.allclose(loss, ref, atol=1e-5, rtol=1e-5), (loss, ref)

    # Also exercise a ragged, multi-tile batch (no jnp.pad path) for robustness.
    b2, c2 = 37, num_classes
    k1, k2 = jax.random.split(jax.random.PRNGKey(1))
    logits2 = jax.random.normal(k1, (b2, c2), dtype=jnp.float32)
    targets2 = jax.random.randint(k2, (b2,), 0, c2, dtype=jnp.int32)
    loss2 = jax.block_until_ready(
        cross_entropy_label_smooth(logits2, targets2, num_classes=c2,
                                   epsilon=epsilon, tile_b=16))
    ref2 = _reference(logits2, targets2, c2, epsilon)
    assert jnp.allclose(loss2, ref2, atol=1e-5, rtol=1e-5), (loss2, ref2)

    print("KERNEL_OK")
</pallas_src>

<mosaic_0001>
module attributes {stable_mosaic.version = 11 : i64} {
  func.func @_ce_label_smooth_kernel(%arg0: i32, %arg1: memref<8x32xf32, #tpu.memory_space<vmem>>, %arg2: memref<8x1xi32, #tpu.memory_space<vmem>>, %arg3: memref<1x8x128xf32, #tpu.memory_space<vmem>>) attributes {dimension_semantics = [#tpu.dimension_semantics<parallel>], iteration_bounds = array<i64: 1>, scalar_prefetch = 0 : i64, scratch_operands = 0 : i64, tpu.core_type = #tpu.core_type<tc>, window_params = [{transform_indices = @transform_0, window_bounds = array<i64: 8, 32>}, {transform_indices = @transform_1, window_bounds = array<i64: 8, 1>}, {transform_indices = @transform_2, window_bounds = array<i64: 1, 8, 128>}]} {
    %c0 = arith.constant 0 : index
    %c0_0 = arith.constant 0 : index
    %0 = vector.load %arg1[%c0, %c0_0] : memref<8x32xf32, #tpu.memory_space<vmem>>, vector<8x32xf32>
    %c8_i32 = arith.constant 8 : i32
    %1 = arith.muli %arg0, %c8_i32 : i32
    %2 = tpu.iota {dimensions = array<i32: 0>} : vector<8x1xi32>
    %3 = vector.broadcast %1 : i32 to vector<8x1xi32>
    %4 = arith.addi %3, %2 : vector<8x1xi32>
    %c8_i32_1 = arith.constant 8 : i32
    %5 = vector.broadcast %c8_i32_1 : i32 to vector<8x1xi32>
    %6 = arith.cmpi slt, %4, %5 : vector<8x1xi32>
    %cst = arith.constant dense<0xFF800000> : vector<8xf32>
    %7 = vector.multi_reduction <maximumf>, %0, %cst [1] : vector<8x32xf32> to vector<8xf32>
    %8 = vector.shape_cast %7 : vector<8xf32> to vector<8x1xf32>
    %9 = vector.broadcast %8 : vector<8x1xf32> to vector<8x32xf32>
    %10 = arith.subf %0, %9 : vector<8x32xf32>
    %11 = math.exp %10 : vector<8x32xf32>
    %cst_2 = arith.constant dense<0.000000e+00> : vector<8xf32>
    %12 = vector.multi_reduction <add>, %11, %cst_2 [1] : vector<8x32xf32> to vector<8xf32>
    %13 = vector.shape_cast %12 : vector<8xf32> to vector<8x1xf32>
    %14 = math.log %13 : vector<8x1xf32>
    %c0_3 = arith.constant 0 : index
    %c0_4 = arith.constant 0 : index
    %15 = vector.load %arg2[%c0_3, %c0_4] : memref<8x1xi32, #tpu.memory_space<vmem>>, vector<8x1xi32>
    %16 = tpu.iota {dimensions = array<i32: 1>} : vector<1x32xi32>
    %17 = vector.broadcast %16 : vector<1x32xi32> to vector<8x32xi32>
    %18 = vector.broadcast %15 : vector<8x1xi32> to vector<8x32xi32>
    %19 = arith.cmpi eq, %17, %18 : vector<8x32xi32>
    %cst_5 = arith.constant 0.000000e+00 : f32
    %20 = vector.broadcast %cst_5 : f32 to vector<8x32xf32>
    %21 = arith.select %19, %10, %20 : vector<8x32xi1>, vector<8x32xf32>
    %cst_6 = arith.constant dense<0.000000e+00> : vector<8xf32>
    %22 = vector.multi_reduction <add>, %21, %cst_6 [1] : vector<8x32xf32> to vector<8xf32>
    %23 = vector.shape_cast %22 : vector<8xf32> to vector<8x1xf32>
    %cst_7 = arith.constant dense<0.000000e+00> : vector<8xf32>
    %24 = vector.multi_reduction <add>, %10, %cst_7 [1] : vector<8x32xf32> to vector<8xf32>
    %25 = vector.shape_cast %24 : vector<8xf32> to vector<8x1xf32>
    %cst_8 = arith.constant 1.000000e+00 : f32
    %cst_9 = arith.constant 1.000000e-01 : f32
    %26 = arith.subf %cst_8, %cst_9 : f32
    %27 = vector.broadcast %26 : f32 to vector<8x1xf32>
    %28 = arith.mulf %27, %23 : vector<8x1xf32>
    %29 = arith.subf %14, %28 : vector<8x1xf32>
    %cst_10 = arith.constant 1.000000e-01 : f32
    %cst_11 = arith.constant 3.125000e-02 : f32
    %30 = arith.mulf %cst_10, %cst_11 : f32
    %31 = vector.broadcast %30 : f32 to vector<8x1xf32>
    %32 = arith.mulf %31, %25 : vector<8x1xf32>
    %33 = arith.subf %29, %32 : vector<8x1xf32>
    %cst_12 = arith.constant 0.000000e+00 : f32
    %34 = vector.broadcast %cst_12 : f32 to vector<8x1xf32>
    %35 = arith.select %6, %33, %34 : vector<8x1xi1>, vector<8x1xf32>
    %36 = vector.shape_cast %35 : vector<8x1xf32> to vector<1x8x1xf32>
    %cst_13 = arith.constant dense<0.000000e+00> : vector<1xf32>
    %37 = vector.multi_reduction <add>, %36, %cst_13 [1, 2] : vector<1x8x1xf32> to vector<1xf32>
    %38 = vector.shape_cast %37 : vector<1xf32> to vector<1x1x1xf32>
    %39 = vector.extract %38[0, 0, 0] : f32 from vector<1x1x1xf32>
    %40 = vector.broadcast %39 : f32 to vector<1x8x128xf32>
    %c0_14 = arith.constant 0 : index
    %c0_15 = arith.constant 0 : index
    %c0_16 = arith.constant 0 : index
    %41 = vector.load %arg3[%c0_14, %c0_15, %c0_16] : memref<1x8x128xf32, #tpu.memory_space<vmem>>, vector<1x8x128xf32>
    tpu.vector_store %arg3[%c0_14, %c0_15, %c0_16], %40 {strides = array<i32>} : memref<1x8x128xf32, #tpu.memory_space<vmem>>, vector<1x8x128xf32>,
    return
  }
  func.func @transform_0(%arg0: i32) -> (i32, i32) {
    %c0_i32 = arith.constant 0 : i32
    %c0_i32_0 = arith.constant 0 : i32
    return %arg0, %c0_i32 : i32, i32
  }
  func.func @transform_1(%arg0: i32) -> (i32, i32) {
    %c0_i32 = arith.constant 0 : i32
    %c0_i32_0 = arith.constant 0 : i32
    return %arg0, %c0_i32 : i32, i32
  }
  func.func @transform_2(%arg0: i32) -> (i32, i32, i32) {
    %c0_i32 = arith.constant 0 : i32
    %c0_i32_0 = arith.constant 0 : i32
    %c0_i32_1 = arith.constant 0 : i32
    return %arg0, %c0_i32, %c0_i32_0 : i32, i32, i32
  }
}

</mosaic_0001>

<bundles_post_ra>
// kernel: tpu_custom_call.1
= control target key start
LH: loop header
LB: loop body
LE: loop exit
PB: predicated region body
PF: predicated region fallthrough
CT: control target
= control target key end

     0   :  { %vm19_vm0 = vcmask 261120   ;;  %s138_s0 = inlined_call_operand.vmem [shape: f32[8,32], index: 0, kind: input, shape index: {}]   ;;  %s139_s1 = inlined_call_operand.vmem [shape: s32[8,1], index: 1, kind: input, shape index: {}]   ;;  %s140_s2 = inlined_call_operand.hbm [shape: f32[1,8,128], index: 2, kind: output, shape index: {}]  }
   0x1   :  { %v12_v0 = vld [vmem:[%s138_s0] sm:$0xff] }
   0x2   :  { %7 = vsyncpa [#allocation3], 0  ;;  %v20_v1 = vsel %vm19_vm0, %v12_v0, -inf  ;;  %v108_v2 = vmov 0   ;;  %v31_v3 = vld [vmem:[%s139_s1] sm:$0xff]  ;;  %v32_v7 = vlaneseq  ;;  %vm50_vm2 = vcmask 7168  }
   0x3   :  { %81 = vset.pattern.permute.xlu0 %v108_v2  ;;  %s109_s0 = smov [#allocation2]  }
   0x4   :  { %21 = vmax.xlane.f32.xlu0 %v20_v1  ;;  %v33_v8 = vand.u32 127, %v32_v7  ;;  %s69_s1 = sshll.u32 %s109_s0, 4  ;;  %s70_s1 = int_to_ptr.vmem [resolvable:$true] %s69_s1 }
   0x5   :  { %s86_s14 = scalar_lea.vmem %s70_s1, 128  ;;  %p91_p1 = scmp.lt.s32.totalorder %s70_s1, %s70_s1 }
   0x6   :  { %p87_p0 = scmp.ne.s32.totalorder %s70_s1, %s86_s14  ;;  %p92_p2 = scmp.lt.s32.totalorder %s86_s14, %s86_s14 }
   0x8   :  { %p93_p3 = por %p92_p2, %p91_p1 }
   0xa   :  { %p94_p4 = pnand %p93_p3, %p87_p0 }
  0x1a   :  { %35 = vperm.xlu0 %81, %v31_v3  }
  0x8d   :  { %v22_v4 = vpop.xlane.xlu0 %21 }
  0x8e   :  { %v23_v5 = vsub.f32 %v12_v0, %v22_v4 }
  0x90   :  { %v24_v6 = vmul.f32 1.442695, %v23_v5  ;;  %v42_v14 = vsel %vm19_vm0, %v23_v5, 0.0 }
  0x92   :  { %82 = vpow2.f32 %v24_v6 }
  0x95   :  { %v36_v9 = vpop.permute.xlu0 %35 }
  0x96   :  { %vm37_vm1 = vcmp.eq.s32.totalorder %v33_v8, %v36_v9 }
  0x97   :  { %v38_v12 = vsel %vm37_vm1, %v23_v5, 0.0 }
  0x98   :  { %v39_v13 = vsel %vm19_vm0, %v38_v12, 0.0 }
  0x9f   :  { %v83_v10 = vpop.eup %82 }
  0xa0   :  { %v26_v11 = vsel %vm19_vm0, %v83_v10, 0.0 }
  0xa1   :  { %27 = vadd.xlane.f32.xlu1 %v26_v11 }
  0xa5   :  { %40 = vadd.xlane.f32.xlu1 %v39_v13 }
  0xa9   :  { %43 = vadd.xlane.f32.xlu1 %v42_v14 }
 0x12a   :  { %v28_v15 = vpop.xlane.xlu1 %27 }
 0x12b   :  { %84 = vlog2.f32 %v28_v15 }
 0x12e   :  { %v41_v16 = vpop.xlane.xlu1 %40 }
 0x12f   :  { %v45_v20 = vmul.f32 0.9, %v41_v16 }
 0x132   :  { %v44_v18 = vpop.xlane.xlu1 %43 }
 0x133   :  { %v47_v22 = vmul.f32 0.003125, %v44_v18 }
 0x138   :  { %v85_v17 = vpop.eup %84 }
 0x139   :  { %v30_v19 = vmul.f32 0.6931472, %v85_v17 }
 0x13b   :  { %v46_v21 = vsub.f32 %v30_v19, %v45_v20 }
 0x13d   :  { %v48_v23 = vsub.f32 %v46_v21, %v47_v22 }
 0x13f   :  { %v51_v24 = vsel %vm50_vm2, %v48_v23, 0.0 }
 0x140   :  { %52 = vadd.xlane.f32.xlu1 %v51_v24 }
 0x1c9   :  { %v53_v25 = vpop.xlane.xlu1 %52 }
 0x1ca   :  { %v54_v26 = vrot.slane %v53_v25, 4 }
 0x1cc   :  { %v55_v27 = vadd.f32 %v54_v26, %v53_v25 }
 0x1ce   :  { %v56_v28 = vrot.slane %v55_v27, 2 }
 0x1d0   :  { %v57_v29 = vadd.f32 %v56_v28, %v55_v27 }
 0x1d2   :  { %v58_v30 = vrot.slane %v57_v29, 1 }
 0x1d4   :  { %v59_v31 = vadd.f32 %v58_v30, %v57_v29 }
 0x1d6   :  { %77 = vpush %v59_v31 }
 0x207   :  { %s78_s13 = spop %77 }
 0x208   :  { %v61_v32 = vstv %s78_s13 }
 0x209   :  { %62 = vst [vmem:[#allocation2] sm:$0xff] %v61_v32 }
 0x20a   :  { %97 = shalt.err (!%p94_p4)
}
 0x20b   :  { %72 = dma.vmem_to_hbm [thread:$0]  %s70_s1, 128, %s140_s2, [#allocation3]  }
 0x20c   :  { %106 = dma.done.wait [#allocation3], 128  }
 0x20d   :  { %107 = vsyncadd [#allocation3], 4294967168 }
 0x20e   :  { %76 = vsyncpa [#allocation3], 1 }

</bundles_post_ra>
